<compile_context>
chip_gen: v7x
topology: tpu7x:2x2x1
jax: 0.10.0
libtpu: 0.0.40
codegen_flags: <defaults>
</compile_context>

<pallas_src>
import math
from functools import partial

import jax
import jax.numpy as jnp
from jax.experimental import pallas as pl
from jax.experimental.pallas import tpu as pltpu


NEG_INF = -1e9
# Explicit VMEM ceiling with headroom: fits v7x (64 MiB physical) and raises the
# default scoped limit on v5e/v6e so larger tiles can be used at real model sizes.
VMEM_LIMIT_BYTES = 48 * 1024 * 1024


# ----------------------------------------------------------------------------
# Tile-size helpers (respect the (8, 128) block constraints; bf16-aware sublanes)
# ----------------------------------------------------------------------------
def _sublane_tile(n, min_tile=16, max_tile=512):
    """Second-to-last (sublane) dim tile: prefer >=16 (full bf16 vregs), <=max_tile."""
    for c in (1024, 512, 256, 128, 64, 32, 16, 8):
        if min_tile <= c <= max_tile and n % c == 0:
            return c
    return n


def _lane_tile(n, max_tile=512):
    """Last (lane) dim tile: multiple of 128, else the full dim."""
    for c in (1024, 512, 256, 128):
        if c <= max_tile and n % c == 0:
            return c
    return n


def _attn_tiles(seq_len):
    """(q-tile, k-tile) along the sequence for the flash-attention kernel."""
    return _sublane_tile(seq_len, max_tile=256), _lane_tile(seq_len, max_tile=512)


def _attn_exp_dtype():
    """bf16 exp on v6e/v7x (bf16 EUP ~2x transcendental throughput); f32 elsewhere."""
    try:
        kind = jax.devices()[0].device_kind.lower()
    except Exception:
        return jnp.float32
    return jnp.bfloat16 if ("v6" in kind or "v7" in kind) else jnp.float32


def _cparams(dims):
    return pltpu.CompilerParams(dimension_semantics=dims,
                                vmem_limit_bytes=VMEM_LIMIT_BYTES)


# ----------------------------------------------------------------------------
# Kernel 1: tiled linear (matmul + bias [+ ReLU])  — fused QKV and head logits
# ----------------------------------------------------------------------------
def _linear_kernel(x_ref, w_ref, b_ref, o_ref, acc_ref, *, activation):
    k = pl.program_id(2)

    @pl.when(k == 0)
    def _():
        acc_ref[...] = jnp.zeros_like(acc_ref)

    acc_ref[...] += jnp.dot(x_ref[...], w_ref[...],
                            preferred_element_type=jnp.float32)

    @pl.when(k == pl.num_programs(2) - 1)
    def _():
        y = acc_ref[...] + b_ref[...]
        if activation == "relu":
            y = jnp.maximum(y, 0.0)
        o_ref[...] = y.astype(o_ref.dtype)


def linear(x, w, b, activation=None, out_dtype=jnp.bfloat16):
    """y = x @ w + b (optionally ReLU).  x:(N,Din) bf16, w:(Din,Dout) bf16, b:(1,Dout) f32."""
    N, Din = x.shape
    Dout = w.shape[1]
    tm = _sublane_tile(N)
    tn = _lane_tile(Dout)
    tk = _lane_tile(Din)
    return pl.pallas_call(
        partial(_linear_kernel, activation=activation),
        out_shape=jax.ShapeDtypeStruct((N, Dout), out_dtype),
        grid=(N // tm, Dout // tn, Din // tk),
        in_specs=[
            pl.BlockSpec((tm, tk), lambda i, j, k: (i, k)),
            pl.BlockSpec((tk, tn), lambda i, j, k: (k, j)),
            pl.BlockSpec((1, tn), lambda i, j, k: (0, j)),
        ],
        out_specs=pl.BlockSpec((tm, tn), lambda i, j, k: (i, j)),
        scratch_shapes=[pltpu.VMEM((tm, tn), jnp.float32)],
        compiler_params=_cparams(("parallel", "parallel", "arbitrary")),
    )(x, w, b)


# ----------------------------------------------------------------------------
# Kernel 2: tiled matmul with fused residual-add + LayerNorm epilogue
# ----------------------------------------------------------------------------
def _linear_res_ln_kernel(x_ref, w_ref, b_ref, r_ref, g_ref, bt_ref,
                          o_ref, acc_ref, *, eps):
    k = pl.program_id(1)

    @pl.when(k == 0)
    def _():
        acc_ref[...] = jnp.zeros_like(acc_ref)

    acc_ref[...] += jnp.dot(x_ref[...], w_ref[...],
                            preferred_element_type=jnp.float32)

    @pl.when(k == pl.num_programs(1) - 1)
    def _():
        z = acc_ref[...] + b_ref[...] + r_ref[...].astype(jnp.float32)
        mu = jnp.mean(z, axis=-1, keepdims=True)
        var = jnp.mean((z - mu) ** 2, axis=-1, keepdims=True)
        zn = (z - mu) * jax.lax.rsqrt(var + eps)
        o_ref[...] = (zn * g_ref[...] + bt_ref[...]).astype(o_ref.dtype)


def linear_residual_layernorm(x, w, b, res, gamma, beta, eps=1e-5,
                              out_dtype=jnp.bfloat16):
    """LayerNorm(res + (x @ w + b)); full d_model kept in one lane block for the LN."""
    N, Din = x.shape
    D = w.shape[1]
    tm = _sublane_tile(N, max_tile=256)     # full-D f32 accumulator -> cap rows (v7x budget)
    tk = _lane_tile(Din)
    return pl.pallas_call(
        partial(_linear_res_ln_kernel, eps=eps),
        out_shape=jax.ShapeDtypeStruct((N, D), out_dtype),
        grid=(N // tm, Din // tk),
        in_specs=[
            pl.BlockSpec((tm, tk), lambda i, k: (i, k)),
            pl.BlockSpec((tk, D), lambda i, k: (k, 0)),
            pl.BlockSpec((1, D), lambda i, k: (0, 0)),
            pl.BlockSpec((tm, D), lambda i, k: (i, 0)),
            pl.BlockSpec((1, D), lambda i, k: (0, 0)),
            pl.BlockSpec((1, D), lambda i, k: (0, 0)),
        ],
        out_specs=pl.BlockSpec((tm, D), lambda i, k: (i, 0)),
        scratch_shapes=[pltpu.VMEM((tm, D), jnp.float32)],
        compiler_params=_cparams(("parallel", "arbitrary")),
    )(x, w, b, res, gamma, beta)


# ----------------------------------------------------------------------------
# Kernel 3: fused FFN (w1 + ReLU + w2) + residual + LayerNorm, tiled over ff_hidden
# ----------------------------------------------------------------------------
def _ffn_res_ln_kernel(x_ref, w1_ref, b1_ref, w2_ref, b2_ref, g_ref, bt_ref,
                       o_ref, acc_ref, *, eps):
    f = pl.program_id(1)

    @pl.when(f == 0)
    def _():
        acc_ref[...] = jnp.zeros_like(acc_ref)

    h = jnp.dot(x_ref[...], w1_ref[...], preferred_element_type=jnp.float32)
    h = jnp.maximum(h + b1_ref[...], 0.0)
    acc_ref[...] += jnp.dot(h.astype(w2_ref.dtype), w2_ref[...],
                            preferred_element_type=jnp.float32)

    @pl.when(f == pl.num_programs(1) - 1)
    def _():
        z = acc_ref[...] + b2_ref[...] + x_ref[...].astype(jnp.float32)
        mu = jnp.mean(z, axis=-1, keepdims=True)
        var = jnp.mean((z - mu) ** 2, axis=-1, keepdims=True)
        zn = (z - mu) * jax.lax.rsqrt(var + eps)
        o_ref[...] = (zn * g_ref[...] + bt_ref[...]).astype(o_ref.dtype)


def ffn_residual_layernorm(x, w1, b1, w2, b2, gamma, beta, eps=1e-5,
                           out_dtype=jnp.bfloat16):
    """LayerNorm(x + W2 relu(x @ W1 + b1) + b2); hidden activation never leaves VMEM."""
    N, D = x.shape
    F = w1.shape[1]
    tm = _sublane_tile(N, max_tile=256)     # cap rows so w1/w2 tiles + acc fit v7x VMEM
    tf = _lane_tile(F, max_tile=512)
    return pl.pallas_call(
        partial(_ffn_res_ln_kernel, eps=eps),
        out_shape=jax.ShapeDtypeStruct((N, D), out_dtype),
        grid=(N // tm, F // tf),
        in_specs=[
            pl.BlockSpec((tm, D), lambda i, f: (i, 0)),
            pl.BlockSpec((D, tf), lambda i, f: (0, f)),
            pl.BlockSpec((1, tf), lambda i, f: (0, f)),
            pl.BlockSpec((tf, D), lambda i, f: (f, 0)),
            pl.BlockSpec((1, D), lambda i, f: (0, 0)),
            pl.BlockSpec((1, D), lambda i, f: (0, 0)),
            pl.BlockSpec((1, D), lambda i, f: (0, 0)),
        ],
        out_specs=pl.BlockSpec((tm, D), lambda i, f: (i, 0)),
        scratch_shapes=[pltpu.VMEM((tm, D), jnp.float32)],
        compiler_params=_cparams(("parallel", "arbitrary")),
    )(x, w1, b1, w2, b2, gamma, beta)


# ----------------------------------------------------------------------------
# Kernel 4: flash-style masked attention (online softmax, K/V tiled)
#   - reads Q/K/V directly from the fused (B*S, 3D) QKV buffer (lane-blocked heads)
#   - writes the context directly into (B*S, D) layout (lane-dense 128-wide stores)
#   - skips fully-masked (q-tile, k-tile) pairs via scalar-prefetched tile flags
# ----------------------------------------------------------------------------
def _flash_attn_kernel(flags_ref, q_ref, k_ref, v_ref, m_ref, o_ref,
                       m_sc, l_sc, acc_sc, *, scale, exp_dtype):
    b = pl.program_id(0)
    h = pl.program_id(1)
    qi = pl.program_id(2)
    ki = pl.program_id(3)
    H = pl.num_programs(1)
    nq = pl.num_programs(2)
    nk = pl.num_programs(3)

    @pl.when(ki == 0)
    def _():
        m_sc[...] = jnp.full_like(m_sc, -jnp.inf)
        l_sc[...] = jnp.zeros_like(l_sc)
        acc_sc[...] = jnp.zeros_like(acc_sc)

    flat = ((b * H + h) * nq + qi) * nk + ki

    @pl.when(flags_ref[flat] > 0)             # skip fully-masked tiles entirely
    def _():
        q = q_ref[...]                         # (tq, dk) bf16
        k = k_ref[...]                         # (tk, dk) bf16
        v = v_ref[...]                         # (tk, dk) bf16
        mask = m_ref[0, 0]                     # (tq, tk) bf16

        # contract on dk without materializing k.T
        s = jax.lax.dot_general(q, k, (((1,), (1,)), ((), ())),
                                preferred_element_type=jnp.float32) * scale
        s = jnp.where(mask != 0, s, NEG_INF)   # masked_fill(mask == 0, -1e9)

        m_prev = m_sc[...]
        m_new = jnp.maximum(m_prev, jnp.max(s, axis=-1, keepdims=True))
        alpha = jnp.exp(m_prev - m_new)
        p = jnp.exp((s - m_new).astype(exp_dtype))
        l_sc[...] = alpha * l_sc[...] + jnp.sum(p.astype(jnp.float32), axis=-1,
                                                keepdims=True)
        acc_sc[...] = alpha * acc_sc[...] + jnp.dot(
            p.astype(v.dtype), v, preferred_element_type=jnp.float32)
        m_sc[...] = m_new

    @pl.when(ki == nk - 1)
    def _():
        # Guard l==0 (row fully masked everywhere -> output 0 instead of NaN).
        l = jnp.where(l_sc[...] == 0.0, 1.0, l_sc[...])
        inv_l = pl.reciprocal(l, approx=True)
        o_ref[...] = (acc_sc[...] * inv_l).astype(o_ref.dtype)


def flash_attention(qkv, mask, tile_flags, B, S, H, out_dtype=jnp.bfloat16):
    """qkv: (B*S, 3D) bf16 (rows in (b, s) order), mask: (B, H, S, S) bf16,
    tile_flags: (B*H*nq*nk,) int32 -> context (B*S, D) bf16 (head h in lanes h*dk..)."""
    N, threeD = qkv.shape
    D = threeD // 3
    dk = D // H
    # TODO(synk): dk < 128 would need a multi-head-per-step variant; this lane-blocked
    # path requires head_dim to be a multiple of the 128-lane register width.
    assert dk % 128 == 0, "head_dim must be a multiple of 128 for this attention path"
    assert S % 8 == 0
    tq, tk = _attn_tiles(S)
    nq, nk = S // tq, S // tk
    scale = 1.0 / math.sqrt(dk)

    q_spec = pl.BlockSpec((tq, dk), lambda b, h, qi, ki, flags: (b * nq + qi, h))
    k_spec = pl.BlockSpec((tk, dk), lambda b, h, qi, ki, flags: (b * nk + ki, H + h))
    v_spec = pl.BlockSpec((tk, dk), lambda b, h, qi, ki, flags: (b * nk + ki, 2 * H + h))
    m_spec = pl.BlockSpec((1, 1, tq, tk), lambda b, h, qi, ki, flags: (b, h, qi, ki))
    o_spec = pl.BlockSpec((tq, dk), lambda b, h, qi, ki, flags: (b * nq + qi, h))

    return pl.pallas_call(
        partial(_flash_attn_kernel, scale=scale, exp_dtype=_attn_exp_dtype()),
        out_shape=jax.ShapeDtypeStruct((N, D), out_dtype),
        grid_spec=pltpu.PrefetchScalarGridSpec(
            num_scalar_prefetch=1,
            grid=(B, H, nq, nk),
            in_specs=[q_spec, k_spec, v_spec, m_spec],
            out_specs=o_spec,
            scratch_shapes=[
                pltpu.VMEM((tq, 1), jnp.float32),   # running max
                pltpu.VMEM((tq, 1), jnp.float32),   # running sum
                pltpu.VMEM((tq, dk), jnp.float32),  # output accumulator
            ],
        ),
        compiler_params=_cparams(("parallel", "parallel", "parallel", "arbitrary")),
    )(tile_flags, qkv, qkv, qkv, mask)


# ----------------------------------------------------------------------------
# Kernel 5: row softmax over the vocab (follows the tiled logits matmul)
# ----------------------------------------------------------------------------
def _softmax_kernel(x_ref, o_ref):
    x = x_ref[...].astype(jnp.float32)
    x = x - jnp.max(x, axis=-1, keepdims=True)
    e = jnp.exp(x)
    o_ref[...] = (e / jnp.sum(e, axis=-1, keepdims=True)).astype(o_ref.dtype)


def softmax_rows(x, out_dtype=jnp.bfloat16, vmem_budget=8 << 20):
    """softmax over the last dim; row-block size chosen from a VMEM budget."""
    N, V = x.shape
    bytes_per_row = V * (x.dtype.itemsize + jnp.dtype(out_dtype).itemsize) * 2  # 2x buffers
    max_tm = max(8, int(vmem_budget // max(bytes_per_row, 1)))
    tm = _sublane_tile(N, max_tile=min(512, max_tm))
    return pl.pallas_call(
        _softmax_kernel,
        out_shape=jax.ShapeDtypeStruct((N, V), out_dtype),
        grid=(N // tm,),
        in_specs=[pl.BlockSpec((tm, V), lambda i: (i, 0))],
        out_specs=pl.BlockSpec((tm, V), lambda i: (i, 0)),
        compiler_params=_cparams(("parallel",)),
    )(x)


# ----------------------------------------------------------------------------
# Model glue (plain JAX): embeddings, mask prep, layer stacking
# ----------------------------------------------------------------------------
def sinusoidal_pe(max_len, d_model):
    pos = jnp.arange(max_len, dtype=jnp.float32)[:, None]
    div = jnp.exp(
        jnp.arange(0, d_model, 2, dtype=jnp.float32) * (-math.log(10000.0) / d_model)
    )
    pe = jnp.zeros((max_len, d_model), dtype=jnp.float32)
    pe = pe.at[:, 0::2].set(jnp.sin(pos * div))
    pe = pe.at[:, 1::2].set(jnp.cos(pos * div))
    return pe


def gpt_block_forward(p, x, mask_bf16, tile_flags, B, S, H):
    """x: (B*S, D) bf16 (token order (b, s)) -> (B*S, D) bf16."""
    # --- fused QKV projection: one tiled matmul -> (B*S, 3D) --------------------
    qkv = linear(x, p["wqkv"], p["bqkv"])

    # --- flash attention straight off the QKV buffer, context in (B*S, D) -------
    ctx = flash_attention(qkv, mask_bf16, tile_flags, B=B, S=S, H=H)

    # --- attention-out projection with fused residual + LayerNorm ---------------
    # dropout == identity (eval mode)
    x1 = linear_residual_layernorm(ctx, p["wo"], p["bo"], x, p["ln1_g"], p["ln1_b"])

    # --- fused FFN (w1 + ReLU + w2) with residual + LayerNorm -------------------
    x2 = ffn_residual_layernorm(x1, p["w1"], p["b1"], p["w2"], p["b2"],
                                p["ln2_g"], p["ln2_b"])
    return x2


def gpt_forward(params, trg, trg_mask):
    """trg: (S, B) int32, trg_mask: (B, H, S, S) -> (S, B, vocab) probabilities (bf16)."""
    S, B = trg.shape
    d_model = params["emb"].shape[1]
    H = params["num_heads"]
    assert S <= params["pe"].shape[0], "sequence length exceeds max_len"

    # token embedding * sqrt(d_model) + sinusoidal positional encoding (f32 glue)
    x = params["emb"][trg] * math.sqrt(d_model) + params["pe"][:S][:, None, :]
    # flatten to (B*S, D) token slab, bf16 for the MXU path
    x = jnp.transpose(x, (1, 0, 2)).reshape(B * S, d_model).astype(jnp.bfloat16)

    # mask kept with the module's (B, H, S, S) semantics, stored bf16 (half the DMA);
    # per-tile "any unmasked" flags drive the compute skip inside the attention kernel.
    tq, tk = _attn_tiles(S)
    nq, nk = S // tq, S // tk
    mask_bf16 = trg_mask.astype(jnp.bfloat16)
    nz = (trg_mask != 0).reshape(B, H, nq, tq, nk, tk)
    tile_flags = jnp.any(nz, axis=(3, 5)).astype(jnp.int32).reshape(-1)

    for lyr in params["layers"]:
        x = gpt_block_forward(lyr, x, mask_bf16, tile_flags, B, S, H)

    # output head: tiled logits matmul (bf16) + budgeted row-softmax kernel
    logits = linear(x, params["w_out"], params["b_out"])          # (B*S, V) bf16
    probs = softmax_rows(logits)                                  # (B*S, V) bf16
    V = probs.shape[-1]
    return probs.reshape(B, S, V).transpose(1, 0, 2)              # (S, B, V)


# ----------------------------------------------------------------------------
# Deterministic parameter construction
# ----------------------------------------------------------------------------
def init_params(key, num_layers, d_model, num_heads, ff_hidden_dim, vocab_size, max_len):
    def dense(k, din, dout):
        w = 0.02 * jax.random.normal(k, (din, dout), dtype=jnp.float32)
        b = jnp.zeros((1, dout), dtype=jnp.float32)
        return w.astype(jnp.bfloat16), b          # bf16 weights, f32 bias

    keys = jax.random.split(key, 2 + num_layers)
    emb = 0.02 * jax.random.normal(keys[0], (vocab_size, d_model), dtype=jnp.float32)
    pe = sinusoidal_pe(max_len, d_model)

    layers = []
    for li in range(num_layers):
        lk = jax.random.split(keys[1 + li], 6)
        wq, bq = dense(lk[0], d_model, d_model)
        wk, bk = dense(lk[1], d_model, d_model)
        wv, bv = dense(lk[2], d_model, d_model)
        wo, bo = dense(lk[3], d_model, d_model)
        w1, b1 = dense(lk[4], d_model, ff_hidden_dim)
        w2, b2 = dense(lk[5], ff_hidden_dim, d_model)
        layers.append(
            dict(
                wqkv=jnp.concatenate([wq, wk, wv], axis=1),   # (D, 3D) bf16
                bqkv=jnp.concatenate([bq, bk, bv], axis=1),   # (1, 3D) f32
                wo=wo, bo=bo, w1=w1, b1=b1, w2=w2, b2=b2,
                ln1_g=jnp.ones((1, d_model), jnp.float32),
                ln1_b=jnp.zeros((1, d_model), jnp.float32),
                ln2_g=jnp.ones((1, d_model), jnp.float32),
                ln2_b=jnp.zeros((1, d_model), jnp.float32),
            )
        )

    w_out, b_out = dense(keys[-1], d_model, vocab_size)
    return dict(emb=emb, pe=pe, layers=layers, w_out=w_out, b_out=b_out,
                num_heads=num_heads)


# ----------------------------------------------------------------------------
if __name__ == "__main__":
    # small, forward-consistent shapes (head_dim = d_model / num_heads = 128)
    num_layers = 2
    d_model = 256
    num_heads = 2
    ff_hidden_dim = 512
    vocab_size = 512
    max_len = 128
    seq_len = 64
    batch_size = 2

    key = jax.random.PRNGKey(0)
    k_param, k_tok = jax.random.split(key)

    params = init_params(
        k_param, num_layers, d_model, num_heads, ff_hidden_dim, vocab_size, max_len
    )

    # trg: (seq_len, batch_size) token indices
    trg = jax.random.randint(k_tok, (seq_len, batch_size), 0, vocab_size, dtype=jnp.int32)
    # causal mask: (batch, heads, seq, seq), 1 = attend, 0 = masked
    causal = jnp.tril(jnp.ones((seq_len, seq_len), dtype=jnp.float32))
    trg_mask = jnp.broadcast_to(causal, (batch_size, num_heads, seq_len, seq_len))

    out = gpt_forward(params, trg, trg_mask)
    out = jax.block_until_ready(out)

    assert out.shape == (seq_len, batch_size, vocab_size)
    out_f32 = out.astype(jnp.float32)
    assert bool(jnp.all(jnp.isfinite(out_f32)))
    # rows of the final softmax must sum to 1 (bf16 probabilities -> loose tolerance)
    assert bool(jnp.allclose(jnp.sum(out_f32, axis=-1), 1.0, atol=2e-2))
    # TODO(synk): dropout layers are treated as identity (deterministic eval mode).
    print("KERNEL_OK")
</pallas_src>

<mosaic_0001>
module attributes {stable_mosaic.version = 11 : i64} {
  func.func @_linear_kernel(%arg0: i32, %arg1: i32, %arg2: i32, %arg3: memref<128x256xbf16, #tpu.memory_space<vmem>>, %arg4: memref<256x256xbf16, #tpu.memory_space<vmem>>, %arg5: memref<1x256xf32, #tpu.memory_space<vmem>>, %arg6: memref<128x256xbf16, #tpu.memory_space<vmem>>, %arg7: memref<128x256xf32, #tpu.memory_space<vmem>>) attributes {dimension_semantics = [#tpu.dimension_semantics<parallel>, #tpu.dimension_semantics<parallel>, #tpu.dimension_semantics<arbitrary>], iteration_bounds = array<i64: 1, 3, 1>, scalar_prefetch = 0 : i64, scratch_operands = 1 : i64, tpu.core_type = #tpu.core_type<tc>, window_params = [{transform_indices = @transform_0, window_bounds = array<i64: 128, 256>}, {transform_indices = @transform_1, window_bounds = array<i64: 256, 256>}, {transform_indices = @transform_2, window_bounds = array<i64: 1, 256>}, {transform_indices = @transform_3, window_bounds = array<i64: 128, 256>}]} {
    %c0_i32 = arith.constant 0 : i32
    %0 = arith.cmpi eq, %arg2, %c0_i32 : i32
    %1 = arith.extui %0 : i1 to i32
    %c0_i32_0 = arith.constant 0 : i32
    %2 = arith.cmpi ne, %1, %c0_i32_0 : i32
    scf.if %2 {
      %cst_10 = arith.constant 0.000000e+00 : f32
      %12 = vector.broadcast %cst_10 : f32 to vector<128x256xf32>
      %c0_11 = arith.constant 0 : index
      %c0_12 = arith.constant 0 : index
      %13 = vector.load %arg7[%c0_11, %c0_12] : memref<128x256xf32, #tpu.memory_space<vmem>>, vector<128x256xf32>
      tpu.vector_store %arg7[%c0_11, %c0_12], %12 {strides = array<i32>} : memref<128x256xf32, #tpu.memory_space<vmem>>, vector<128x256xf32>,
    } else {
    }
    %c0 = arith.constant 0 : index
    %c0_1 = arith.constant 0 : index
    %3 = vector.load %arg7[%c0, %c0_1] : memref<128x256xf32, #tpu.memory_space<vmem>>, vector<128x256xf32>
    %c0_2 = arith.constant 0 : index
    %c0_3 = arith.constant 0 : index
    %4 = vector.load %arg3[%c0_2, %c0_3] : memref<128x256xbf16, #tpu.memory_space<vmem>>, vector<128x256xbf16>
    %c0_4 = arith.constant 0 : index
    %c0_5 = arith.constant 0 : index
    %5 = vector.load %arg4[%c0_4, %c0_5] : memref<256x256xbf16, #tpu.memory_space<vmem>>, vector<256x256xbf16>
    %cst = arith.constant dense<0.000000e+00> : vector<128x256xf32>
    %6 = tpu.matmul %4, %5, %cst {dimension_numbers = #tpu.dot_dimension_numbers<[1], [0], [0], [1], [0, 0, 1, 1], [], []>} : vector<128x256xbf16>, vector<256x256xbf16>, vector<128x256xf32> -> vector<128x256xf32>
    %7 = arith.addf %3, %6 : vector<128x256xf32>
    %c0_6 = arith.constant 0 : index
    %c0_7 = arith.constant 0 : index
    %8 = vector.load %arg7[%c0_6, %c0_7] : memref<128x256xf32, #tpu.memory_space<vmem>>, vector<128x256xf32>
    tpu.vector_store %arg7[%c0_6, %c0_7], %7 {strides = array<i32>} : memref<128x256xf32, #tpu.memory_space<vmem>>, vector<128x256xf32>,
    %c0_i32_8 = arith.constant 0 : i32
    %9 = arith.cmpi eq, %arg2, %c0_i32_8 : i32
    %10 = arith.extui %9 : i1 to i32
    %c0_i32_9 = arith.constant 0 : i32
    %11 = arith.cmpi ne, %10, %c0_i32_9 : i32
    scf.if %11 {
      %c0_10 = arith.constant 0 : index
      %c0_11 = arith.constant 0 : index
      %12 = vector.load %arg7[%c0_10, %c0_11] : memref<128x256xf32, #tpu.memory_space<vmem>>, vector<128x256xf32>
      %c0_12 = arith.constant 0 : index
      %c0_13 = arith.constant 0 : index
      %13 = vector.load %arg5[%c0_12, %c0_13] : memref<1x256xf32, #tpu.memory_space<vmem>>, vector<1x256xf32>
      %14 = vector.broadcast %13 : vector<1x256xf32> to vector<128x256xf32>
      %15 = arith.addf %12, %14 : vector<128x256xf32>
      %16 = arith.truncf %15 : vector<128x256xf32> to vector<128x256xbf16>
      %c0_14 = arith.constant 0 : index
      %c0_15 = arith.constant 0 : index
      %17 = vector.load %arg6[%c0_14, %c0_15] : memref<128x256xbf16, #tpu.memory_space<vmem>>, vector<128x256xbf16>
      tpu.vector_store %arg6[%c0_14, %c0_15], %16 {strides = array<i32>} : memref<128x256xbf16, #tpu.memory_space<vmem>>, vector<128x256xbf16>,
    } else {
    }
    return
  }
  func.func @transform_0(%arg0: i32, %arg1: i32, %arg2: i32) -> (i32, i32) {
    %c0_i32 = arith.constant 0 : i32
    return %arg0, %arg2 : i32, i32
  }
  func.func @transform_1(%arg0: i32, %arg1: i32, %arg2: i32) -> (i32, i32) {
    %c0_i32 = arith.constant 0 : i32
    return %arg2, %arg1 : i32, i32
  }
  func.func @transform_2(%arg0: i32, %arg1: i32, %arg2: i32) -> (i32, i32) {
    %c0_i32 = arith.constant 0 : i32
    %c0_i32_0 = arith.constant 0 : i32
    return %c0_i32, %arg1 : i32, i32
  }
  func.func @transform_3(%arg0: i32, %arg1: i32, %arg2: i32) -> (i32, i32) {
    %c0_i32 = arith.constant 0 : i32
    return %arg0, %arg1 : i32, i32
  }
}

</mosaic_0001>

<bundles_post_ra>
// kernel: tpu_custom_call.1
= control target key start
LH: loop header
LB: loop body
LE: loop exit
PB: predicated region body
PF: predicated region fallthrough
CT: control target
= control target key end

     0   :  { %8 = vsyncpa [#allocation4], 0  ;;  %s1893_s0 = inlined_call_operand.hbm [shape: bf16[128,256], index: 0, kind: input, shape index: {}]   ;;  %s1894_s1 = inlined_call_operand.hbm [shape: bf16[256,768], index: 1, kind: input, shape index: {}]   ;;  %s1895_s2 = inlined_call_operand.vmem [shape: f32[1,768], index: 2, kind: input, shape index: {}]   ;;  %s1896_s3 = inlined_call_operand.hbm [shape: bf16[128,768], index: 3, kind: output, shape index: {}]  }
   0x1   :  { %9 = vsyncpa [#allocation7], 0 }
   0x2   :  { %11 = vsyncpa [#allocation7 + $0x1], 0 }
   0x3   :  { %12 = vsyncpa [#allocation5], 0 }
   0x4   :  { %14 = vsyncpa [#allocation5 + $0x1], 0  ;;  %s1583_s12 = smov 0   ;;  %s1585_s13 = smov 0  }
   0x5   :  { %s1587_s14 = smov 0   ;;  %s1589_s15 = smov 0  }
   0x6   :  { %s1591_s16 = smov 0   ;;  %s1593_s17 = smov 0  }
   0x7 LB: > { %s1125_s18 = sadd.s32 4294967295, %s1552_s17   ;;  %s1126_s19 = sadd.s32 4294967294, %s1552_s17   ;;  %s1552_s17 = sphi %s1593_s17, %s20_s17   ;;  %s1548_s16 = sphi %s1591_s16, %s1923_s16   ;;  %s1544_s15 = sphi %s1589_s15, %s1922_s15   ;;  %s1540_s14 = sphi %s1587_s14, %s1921_s14   ;;  %s1536_s13 = sphi %s1585_s13, %s1920_s13   ;;  %s1532_s12 = sphi %s1583_s12, %s1919_s12  }
   0x8   : > { %p83_p0 = scmp.ne.s32.totalorder %s1540_s14, %s1536_s13  ;;  %p84_p1 = scmp.eq.s32.totalorder %s1552_s17, 0 }
   0x9   : > { %p89_p2 = scmp.ne.s32.totalorder %s1536_s13, %s1532_s12  ;;  %p1620_p3 = scmp.eq.s32.totalorder %s1125_s18, 0 }
   0xa   : > { %p1624_p4 = por %p84_p1, %p83_p0  ;;  %p141_p5 = scmp.eq.s32.totalorder %s1125_s18, 2 }
   0xb   : > { %s1904_s20 = scalar_select %p1620_p3, 1, 0 }
   0xc   : > { %p1630_p6 = por %p1620_p3, %p89_p2  ;;  %p147_p7 = scmp.eq.s32.totalorder %s1126_s19, 2 }
   0xd   : > { %p1634_p8 = por %p141_p5, %p83_p0  ;;  %p1127_p9 = scmp.ge.s32.totalorder %s1552_s17, 1 }
   0xe   : > { %s1906_s22 = scalar_select %p1630_p6, 1, 0 }
   0xf   : > { %s1907_s23 = scalar_select %p1634_p8, 1, 0 }
  0x10   : > { %p1639_p10 = por %p147_p7, %p89_p2  ;;  %p154_p11 = scmp.lt.s32.totalorder %s1552_s17, 4 }
  0x11   : > { %s1554_s26 = smov [#allocation3]   ;;  %p1278_p0 = scmp.lt.s32.totalorder %s1552_s17, 3 }
  0x12   : > { %s1908_s24 = scalar_select %p1639_p10, 1, 0 }
  0x13   : > { %p1644_p12 = pnand %p1127_p9, %p154_p11  ;;  %s172_s27 = sshll.u32 %s1554_s26, 4  ;;  %s173_s27 = int_to_ptr.vmem [resolvable:$true] %s172_s27 }
  0x14   : > { %p1659_p2 = pnand %p1278_p0, %p1624_p4  ;;  %s35_s30 = sadd.s32 1, %s1548_s16 }
  0x15   : > { %s1909_s25 = scalar_select %p1644_p12, 1, 0 }
  0x16   : > { %p1265_p13 = pneg %p1644_p12  ;;  %s1408_s6 = scalar_lea.hbm %s1893_s0, 2048 }
  0x17   : > { %s1911_s29 = scalar_select %p1659_p2, 1, 0 }
  0x18   : > { %p1653_p1 = pnand %p1265_p13, %p1620_p3  ;;  %p1409_p5 = scmp.ne.s32.totalorder %s1893_s0, %s1408_s6 }
  0x19   : > { %p1415_p4 = scmp.lt.u32.totalorder %s1408_s6, %s1893_s0 }
  0x1a   : > { %p1410_p7 = pneg %p1653_p1 }
  0x1c   : > { %p1411_p9 = pnand %p1410_p7, %p1409_p5 }
  0x1e   : > { %p1412_p11 = pneg %p1411_p9 }
  0x20   : > { %p1417_p13 = pnand %p1415_p4, %p1412_p11 }
  0x22   : > { %1420 = shalt.err (!%p1417_p13)
}
  0x23   : > { %s1421_s11 = scalar_lea.vmem %s173_s27, 2048  ;;  %p1429_p6 = scmp.lt.s32.totalorder %s173_s27, %s173_s27 }
  0x24   : > { %p1422_p0 = scmp.ne.s32.totalorder %s173_s27, %s1421_s11  ;;  %p1430_p3 = scmp.lt.s32.totalorder %s1421_s11, %s1421_s11 }
  0x26   : > { %p1424_p10 = pnand %p1422_p0, %p1410_p7  ;;  %p1431_p12 = por %p1430_p3, %p1429_p6 }
  0x28   : > { %p1425_p8 = pneg %p1424_p10 }
  0x2a   : > { %p1432_p2 = pnand %p1431_p12, %p1425_p8 }
  0x2c   : > { %1435 = shalt.err (!%p1432_p2)
}
  0x2d   : > { %s1903_s18 = smov 128   ;;  %s1556_s19 = smov 8  }
  0x2e   : > { %1268 = dma.hbm_to_vmem [thread:$0]  (!%p1653_p1), %s1893_s0, 2048, %s173_s27, [#allocation4], %s1903_s18, %s1903_s18, %s1556_s19  }
  0x2f   : > { %p37_p10 = scmp.ge.s32.totalorder %s35_s30, 3  ;;  %s76_s4 = sadd.s32 1, %s1540_s14 }
  0x30   : > { %s186_s5 = sand.u32 1, %s1540_s14   ;;  %s1207_s8 = sshll.u32 %s1548_s16, 7 }
  0x31   : > { %s1925_s30 = smov (%p37_p10, %s35_s30), 0  ;;  %s1130_s6 = sshll.u32 %s186_s5, 8 }
  0x32   : > { %s72_s7 = ssub.s32 %s1548_s16, %s1925_s30  ;;  %s1693_s10 = scalar_lea.hbm %s1894_s1, %s1207_s8 }
  0x33   : > { %p74_p3 = scmp.eq.s32.totalorder %s72_s7, 0  ;;  %s190_s27 = scalar_lea.vmem [#allocation6], %s1130_s6 }
  0x34   : > { %s200_s11 = sshll.u32 %s190_s27, 4  ;;  %s1700_s26 = scalar_lea.sflag [#allocation7], %s186_s5  ;;  %s1698_s11 = int_to_ptr.vmem [resolvable:$true] %s200_s11 }
  0x35   : > { %s1696_s21 = scalar_select %p74_p3, %s1540_s14, %s76_s4  }
  0x36   : > { %s1436_s18 = scalar_lea.hbm %s1693_s10, 4096  ;;  %p1912_p8 = scmp.ne.s32.totalorder %s1911_s29, 0 }
  0x37   : > { %p1437_p6 = scmp.ne.s32.totalorder %s1693_s10, %s1436_s18  ;;  %s1441_s28 = scalar_lea.hbm %s1894_s1, 12288 }
  0x38   : > { %p1438_p12 = pneg %p1912_p8  ;;  %p1442_p5 = scmp.lt.u32.totalorder %s1693_s10, %s1894_s1 }
  0x39   : > { %p1443_p7 = scmp.lt.u32.totalorder %s1441_s28, %s1436_s18  ;;  %p1445_p11 = scmp.lt.u32.totalorder %s1436_s18, %s1693_s10 }
  0x3a   : > { %p1439_p1 = pnand %p1438_p12, %p1437_p6 }
  0x3b   : > { %p1444_p9 = por %p1443_p7, %p1442_p5 }
  0x3c   : > { %p1440_p2 = pneg %p1439_p1 }
  0x3d   : > { %p1446_p4 = por %p1445_p11, %p1444_p9 }
  0x3f   : > { %p1447_p13 = pnand %p1446_p4, %p1440_p2 }
  0x41   : > { %1450 = shalt.err (!%p1447_p13)
}
  0x42   : > { %s1451_s4 = scalar_lea.vmem %s1698_s11, 4096  ;;  %s1557_s5 = smov [#allocation6]  }
  0x43   : > { %p1452_p0 = scmp.ne.s32.totalorder %s1698_s11, %s1451_s4  ;;  %s1456_s27 = sshll.u32 %s1557_s5, 4  ;;  %s1457_s27 = int_to_ptr.vmem [resolvable:$false] %s1456_s27 }
  0x44   : > { %s1458_s7 = scalar_lea.vmem %s1457_s27, 8192  ;;  %p1459_p6 = scmp.lt.s32.totalorder %s1698_s11, %s1457_s27 }
  0x45   : > { %p1454_p10 = pnand %p1452_p0, %p1438_p12  ;;  %p1460_p1 = scmp.lt.s32.totalorder %s1458_s7, %s1451_s4 }
  0x47   : > { %p1455_p3 = pneg %p1454_p10  ;;  %p1461_p5 = por %p1460_p1, %p1459_p6 }
  0x49   : > { %p1462_p7 = pnand %p1461_p5, %p1455_p3 }
  0x4b   : > { %1465 = shalt.err (!%p1462_p7)
}
  0x4c   : > { %s1558_s18 = smov 384   ;;  %s1913_s8 = smov 128  }
  0x4d   : > { %1272 = dma.hbm_to_vmem [thread:$0]  (!%p1912_p8), %s1693_s10, 4096, %s1698_s11, %s1700_s26, %s1558_s18, %s1913_s8, %s1556_s19  }
  0x4e   : > { %p1914_p12 = scmp.ne.s32.totalorder %s1909_s25, 0 }
  0x4f   : > { %p1915_p2 = scmp.ne.s32.totalorder (!%p1914_p12), %s1904_s20, 0 }
  0x50   : > { %220 = sbr.rel (%p1914_p12) target bundleno = 416 (0x1a0), region = 32 }
  0x57   : > { %1519 = dma.done.wait (%p1915_p2), [#allocation4], 2048  }
  0x58   : > { %1521 = vsyncadd (%p1915_p2), [#allocation4], 4294965248  ;;  %s1737_s28 = sand.u32 1, %s1536_s13   ;;  %p1916_p8 = scmp.ne.s32.totalorder %s1906_s22, 0 }
  0x59   : > { %s1135_s29 = sshll.u32 %s1737_s28, 8  ;;  %s227_s6 = scalar_lea.sflag [#allocation7], %s1737_s28 }
  0x5a   : > { %s1741_s9 = scalar_lea.vmem [#allocation6], %s1135_s29 }
  0x5b   : > { %1523 = dma.done.wait (%p1916_p8), %s227_s6, 4096  }
  0x5c   : > { %1525 = vsyncadd (%p1916_p8), %s227_s6, 4294963200  ;;  %v1336_v0 = vld [vmem:[%s1741_s9 + $0x4] ss:$8 sps:$4 sm:$0xff]   ;;  %v1338_v1 = vld [vmem:[%s1741_s9] ss:$8 sps:$4 sm:$0xff]   ;;  %s1137_s20 = sshll.u32 %s1544_s15, 1  ;;  %v838_v48 = vlaneseq }
  0x5d   : > { %624 = vmatprep.subr.bf16.mxu0 %v1336_v0  ;;  %1225 = vmatprep.subr.bf16.mxu1 %v1336_v0  ;;  %v1339_v2 = vld [vmem:[%s1741_s9 + $0x14] ss:$8 sps:$4 sm:$0xff]   ;;  %v1341_v3 = vld [vmem:[%s1741_s9 + $0x10] ss:$8 sps:$4 sm:$0xff]   ;;  %v1342_v4 = vld [vmem:[%s1741_s9 + $0x24] ss:$8 sps:$4 sm:$0xff]  }
  0x5e   : > { %625 = vmatpush1.bf16.msra.mxu0 %v1338_v1  ;;  %1241 = vmatpush1.bf16.msra.mxu1 %v1338_v1  ;;  %v1344_v5 = vld [vmem:[%s1741_s9 + $0x20] ss:$8 sps:$4 sm:$0xff]   ;;  %v1345_v6 = vld [vmem:[%s1741_s9 + $0x34] ss:$8 sps:$4 sm:$0xff]   ;;  %v1347_v7 = vld [vmem:[%s1741_s9 + $0x30] ss:$8 sps:$4 sm:$0xff]  }
  0x5f   : > { %626 = vmatprep.subr.bf16.mxu0 %v1339_v2  ;;  %1226 = vmatprep.subr.bf16.mxu1 %v1339_v2  ;;  %v1348_v8 = vld [vmem:[%s1741_s9 + $0x44] ss:$8 sps:$4 sm:$0xff]   ;;  %v1350_v9 = vld [vmem:[%s1741_s9 + $0x40] ss:$8 sps:$4 sm:$0xff]   ;;  %v1351_v10 = vld [vmem:[%s1741_s9 + $0x54] ss:$8 sps:$4 sm:$0xff]  }
  0x60   : > { %v1353_v11 = vld [vmem:[%s1741_s9 + $0x50] ss:$8 sps:$4 sm:$0xff]   ;;  %v1354_v12 = vld [vmem:[%s1741_s9 + $0x64] ss:$8 sps:$4 sm:$0xff]   ;;  %v1356_v14 = vld [vmem:[%s1741_s9 + $0x60] ss:$8 sps:$4 sm:$0xff]  }
  0x61   : > { %v1386_v13 = vld [vmem:[#allocation3 + $0x4] ss:$8 sps:$4 sm:$0xff]   ;;  %v1357_v16 = vld [vmem:[%s1741_s9 + $0x74] ss:$8 sps:$4 sm:$0xff]   ;;  %v1359_v17 = vld [vmem:[%s1741_s9 + $0x70] ss:$8 sps:$4 sm:$0xff]  }
  0x62   : > { %627 = vmatpush1.bf16.msra.mxu0 %v1341_v3  ;;  %1242 = vmatpush1.bf16.msra.mxu1 %v1341_v3  ;;  %v1389_v15 = vld [vmem:[#allocation3 + $0x44] ss:$8 sps:$4 sm:$0xff]   ;;  %v1362_v19 = vld [vmem:[%s1741_s9 + $0x80] ss:$8 sps:$4 sm:$0xff]   ;;  %v1363_v20 = vld [vmem:[%s1741_s9 + $0x94] ss:$8 sps:$4 sm:$0xff]  }
  0x63   : > { %628 = vmatprep.subr.bf16.mxu0 %v1342_v4  ;;  %1227 = vmatprep.subr.bf16.mxu1 %v1342_v4  ;;  %v1360_v18 = vld [vmem:[%s1741_s9 + $0x84] ss:$8 sps:$4 sm:$0xff]   ;;  %v1365_v21 = vld [vmem:[%s1741_s9 + $0x90] ss:$8 sps:$4 sm:$0xff]   ;;  %v1368_v23 = vld [vmem:[%s1741_s9 + $0xa0] ss:$8 sps:$4 sm:$0xff]  }
  0x64   : > { %656 = vmatprep.mubr.bf16.mxu0 %v1386_v13  ;;  %696 = vmatprep.mubr.bf16.mxu1 %v1389_v15  ;;  %v1366_v22 = vld [vmem:[%s1741_s9 + $0xa4] ss:$8 sps:$4 sm:$0xff]   ;;  %v1369_v24 = vld [vmem:[%s1741_s9 + $0xb4] ss:$8 sps:$4 sm:$0xff]   ;;  %v1371_v25 = vld [vmem:[%s1741_s9 + $0xb0] ss:$8 sps:$4 sm:$0xff]  }
  0x65   : > { %v1372_v26 = vld [vmem:[%s1741_s9 + $0xc4] ss:$8 sps:$4 sm:$0xff]   ;;  %v1374_v27 = vld [vmem:[%s1741_s9 + $0xc0] ss:$8 sps:$4 sm:$0xff]   ;;  %v1375_v28 = vld [vmem:[%s1741_s9 + $0xd4] ss:$8 sps:$4 sm:$0xff]  }
  0x66   : > { %629 = vmatpush1.bf16.msra.mxu0 %v1344_v5  ;;  %1243 = vmatpush1.bf16.msra.mxu1 %v1344_v5  ;;  %v1377_v29 = vld [vmem:[%s1741_s9 + $0xd0] ss:$8 sps:$4 sm:$0xff]   ;;  %v1378_v30 = vld [vmem:[%s1741_s9 + $0xe4] ss:$8 sps:$4 sm:$0xff]   ;;  %v1380_v31 = vld [vmem:[%s1741_s9 + $0xe0] ss:$8 sps:$4 sm:$0xff]  }
  0x67   : > { %630 = vmatprep.subr.bf16.mxu0 %v1345_v6  ;;  %1228 = vmatprep.subr.bf16.mxu1 %v1345_v6  ;;  %v1381_v32 = vld [vmem:[%s1741_s9 + $0xf4] ss:$8 sps:$4 sm:$0xff]   ;;  %v1383_v33 = vld [vmem:[%s1741_s9 + $0xf0] ss:$8 sps:$4 sm:$0xff]   ;;  %v1384_v34 = vld [vmem:[#allocation3] ss:$8 sps:$4 sm:$0xff]  }
  0x68   : > { %v1387_v35 = vld [vmem:[#allocation3 + $0x40] ss:$8 sps:$4 sm:$0xff]   ;;  %v1390_v36 = vld [vmem:[#allocation3 + $0x14] ss:$8 sps:$4 sm:$0xff]   ;;  %v1394_v38 = vld [vmem:[#allocation3 + $0x10] ss:$8 sps:$4 sm:$0xff]  }
  0x69   : > { %v1392_v37 = vld [vmem:[#allocation3 + $0x54] ss:$8 sps:$4 sm:$0xff]   ;;  %v1395_v39 = vld [vmem:[#allocation3 + $0x50] ss:$8 sps:$4 sm:$0xff]   ;;  %v1396_v40 = vld [vmem:[#allocation3 + $0x24] ss:$8 sps:$4 sm:$0xff]  }
  0x6a   : > { %631 = vmatpush1.bf16.msra.mxu0 %v1347_v7  ;;  %1244 = vmatpush1.bf16.msra.mxu1 %v1347_v7  ;;  %v1398_v41 = vld [vmem:[#allocation3 + $0x64] ss:$8 sps:$4 sm:$0xff]   ;;  %v1400_v42 = vld [vmem:[#allocation3 + $0x20] ss:$8 sps:$4 sm:$0xff]   ;;  %v1402_v44 = vld [vmem:[#allocation3 + $0x34] ss:$8 sps:$4 sm:$0xff]  }
  0x6b   : > { %632 = vmatprep.subr.bf16.mxu0 %v1348_v8  ;;  %1229 = vmatprep.subr.bf16.mxu1 %v1348_v8  ;;  %v1401_v43 = vld [vmem:[#allocation3 + $0x60] ss:$8 sps:$4 sm:$0xff]   ;;  %v1404_v45 = vld [vmem:[#allocation3 + $0x74] ss:$8 sps:$4 sm:$0xff]   ;;  %v1406_v46 = vld [vmem:[#allocation3 + $0x30] ss:$8 sps:$4 sm:$0xff]  }
  0x6c   : > { %v1407_v47 = vld [vmem:[#allocation3 + $0x70] ss:$8 sps:$4 sm:$0xff]   ;;  %p262_p9 = scmp.lt.s32.totalorder %s1137_s20, 5  ;;  %v839_v49 = vshrl.u32 %v838_v48, 7  ;;  %s1136_s10 = sshll.u32 %s1737_s28, 7 }
  0x6d   : > { %s1796_s11 = scalar_lea.vmem [#allocation8], %s1136_s10  ;;  %s1224_s26 = sshll.u32 %s1544_s15, 7 }
  0x6e   : > { %633 = vmatpush1.bf16.msra.mxu0 %v1350_v9  ;;  %1245 = vmatpush1.bf16.msra.mxu1 %v1350_v9  ;;  %s1927_s20 = smov (!%p262_p9, %s1137_s20), 5  ;;  %v840_v50 = vsub.s32 0, %v839_v49  ;;  %v844_v52 = vsub.s32 1, %v839_v49  ;;  %s1009_s4 = sshll.u32 %s1796_s11, 4  ;;  %s1841_s4 = int_to_ptr.vmem [resolvable:$true] %s1009_s4 }
  0x6f   : > { %634 = vmatprep.subr.bf16.mxu0 %v1351_v10  ;;  %1230 = vmatprep.subr.bf16.mxu1 %v1351_v10  ;;  %s264_s19 = scalar_lea.vmem %s1895_s2, %s1927_s20  ;;  %s1839_s27 = scalar_lea.hbm %s1896_s3, %s1224_s26 }
  0x70   : > { %v836_v51 = vld [vmem:[%s264_s19] sm:$0x3]  ;;  %s993_s7 = scalar_lea.sflag [#allocation5], %s1737_s28  ;;  %s1466_s18 = scalar_lea.vmem %s1841_s4, 2048 }
  0x71   : > { %v1783_v53 = vrot.slane %v836_v51, %v840_v50  ;;  %v1785_v54 = vrot.slane %v836_v51, %v844_v52  ;;  %p1467_p11 = scmp.ne.s32.totalorder %s1841_s4, %s1466_s18  ;;  %p1917_p4 = scmp.ne.s32.totalorder %s1907_s23, 0 }
  0x72   : > { %635 = vmatpush1.bf16.msra.mxu0 %v1353_v11  ;;  %1246 = vmatpush1.bf16.msra.mxu1 %v1353_v11  ;;  %s1559_s8 = smov [#allocation8]  }
  0x73   : > { %636 = vmatprep.subr.bf16.mxu0 %v1354_v12  ;;  %1231 = vmatprep.subr.bf16.mxu1 %v1354_v12  ;;  %p1468_p13 = pnand %p1467_p11, %p1917_p4  ;;  %s1470_s29 = sshll.u32 %s1559_s8, 4  ;;  %s1471_s29 = int_to_ptr.vmem [resolvable:$false] %s1470_s29 }
  0x74   : > { %s1472_s6 = scalar_lea.vmem %s1471_s29, 4096  ;;  %p1473_p10 = scmp.lt.s32.totalorder %s1841_s4, %s1471_s29 }
  0x75   : > { %p1469_p0 = pneg %p1468_p13  ;;  %p1474_p3 = scmp.lt.s32.totalorder %s1472_s6, %s1466_s18 }
  0x76   : > { %637 = vmatpush1.bf16.msra.mxu0 %v1356_v14  ;;  %1247 = vmatpush1.bf16.msra.mxu1 %v1356_v14 }
  0x77   : > { %638 = vmatprep.subr.bf16.mxu0 %v1357_v16  ;;  %1232 = vmatprep.subr.bf16.mxu1 %v1357_v16  ;;  %p1475_p6 = por %p1474_p3, %p1473_p10 }
  0x79   : > { %p1476_p1 = pnand %p1475_p6, %p1469_p0 }
  0x7a   : > { %639 = vmatpush1.bf16.msra.mxu0 %v1359_v17  ;;  %1248 = vmatpush1.bf16.msra.mxu1 %v1359_v17 }
  0x7b   : > { %640 = vmatprep.subr.bf16.mxu0 %v1360_v18  ;;  %1233 = vmatprep.subr.bf16.mxu1 %v1360_v18 }
  0x7e   : > { %641 = vmatpush1.bf16.msra.mxu0 %v1362_v19  ;;  %1249 = vmatpush1.bf16.msra.mxu1 %v1362_v19 }
  0x7f   : > { %642 = vmatprep.subr.bf16.mxu0 %v1363_v20  ;;  %1234 = vmatprep.subr.bf16.mxu1 %v1363_v20 }
  0x82   : > { %643 = vmatpush1.bf16.msra.mxu0 %v1365_v21  ;;  %1250 = vmatpush1.bf16.msra.mxu1 %v1365_v21 }
  0x83   : > { %644 = vmatprep.subr.bf16.mxu0 %v1366_v22  ;;  %1235 = vmatprep.subr.bf16.mxu1 %v1366_v22 }
  0x86   : > { %645 = vmatpush1.bf16.msra.mxu0 %v1368_v23  ;;  %1251 = vmatpush1.bf16.msra.mxu1 %v1368_v23 }
  0x87   : > { %646 = vmatprep.subr.bf16.mxu0 %v1369_v24  ;;  %1236 = vmatprep.subr.bf16.mxu1 %v1369_v24 }
  0x8a   : > { %647 = vmatpush1.bf16.msra.mxu0 %v1371_v25  ;;  %1252 = vmatpush1.bf16.msra.mxu1 %v1371_v25 }
  0x8b   : > { %648 = vmatprep.subr.bf16.mxu0 %v1372_v26  ;;  %1237 = vmatprep.subr.bf16.mxu1 %v1372_v26 }
  0x8e   : > { %649 = vmatpush1.bf16.msra.mxu0 %v1374_v27  ;;  %1253 = vmatpush1.bf16.msra.mxu1 %v1374_v27 }
  0x8f   : > { %650 = vmatprep.subr.bf16.mxu0 %v1375_v28  ;;  %1238 = vmatprep.subr.bf16.mxu1 %v1375_v28 }
  0x92   : > { %651 = vmatpush1.bf16.msra.mxu0 %v1377_v29  ;;  %1254 = vmatpush1.bf16.msra.mxu1 %v1377_v29 }
  0x93   : > { %652 = vmatprep.subr.bf16.mxu0 %v1378_v30  ;;  %1239 = vmatprep.subr.bf16.mxu1 %v1378_v30 }
  0x96   : > { %653 = vmatpush1.bf16.msra.mxu0 %v1380_v31  ;;  %1255 = vmatpush1.bf16.msra.mxu1 %v1380_v31 }
  0x97   : > { %654 = vmatprep.subr.bf16.mxu0 %v1381_v32  ;;  %1240 = vmatprep.subr.bf16.mxu1 %v1381_v32 }
  0x9a   : > { %655 = vmatpush1.bf16.msra.mxu0 %v1383_v33  ;;  %1256 = vmatpush1.bf16.msra.mxu1 %v1383_v33 }
  0x9d   : > { %657 = vmatmul.mubr.bf16.vlgmr.msra.gmra.mrb[0].mxu0 %v1384_v34  ;;  %697 = vmatmul.mubr.bf16.vlgmr.msra.gmra.mrb[0].mxu1 %v1387_v35 }
  0x9e   : > { %666 = vmatprep.mubr.bf16.mxu0 %v1390_v36  ;;  %706 = vmatprep.mubr.bf16.mxu1 %v1392_v37 }
  0xa5   : > { %667 = vmatmul.mubr.bf16.gmra.mrb[4].mxu0 %v1394_v38  ;;  %707 = vmatmul.mubr.bf16.gmra.mrb[4].mxu1 %v1395_v39 }
  0xa6   : > { %676 = vmatprep.mubr.bf16.mxu0 %v1396_v40  ;;  %716 = vmatprep.mubr.bf16.mxu1 %v1398_v41 }
  0xad   : > { %677 = vmatmul.mubr.bf16.gmra.mrb[8].mxu0 %v1400_v42  ;;  %717 = vmatmul.mubr.bf16.gmra.mrb[8].mxu1 %v1401_v43 }
  0xae   : > { %686 = vmatprep.mubr.bf16.mxu0 %v1402_v44  ;;  %726 = vmatprep.mubr.bf16.mxu1 %v1404_v45 }
  0xb5   : > { %687 = vmatmul.mubr.bf16.gmra.mrb[12].mxu0 %v1406_v46  ;;  %727 = vmatmul.mubr.bf16.gmra.mrb[12].mxu1 %v1407_v47 }
 0x170   : > { %v658_v55 = vpop.f32.mrb[0].mxu0  ;;  %v698_v56 = vpop.f32.mrb[0].mxu1 }
 0x171   : > { %v848_v57 = vadd.f32 %v1783_v53, %v658_v55  ;;  %v864_v58 = vadd.f32 %v1783_v53, %v698_v56  ;;  %v660_v59 = vpop.f32.mrb[1].mxu0  ;;  %v700_v60 = vpop.f32.mrb[1].mxu1 }
 0x172   : > { %v849_v61 = vadd.f32 %v1785_v54, %v660_v59  ;;  %v865_v62 = vadd.f32 %v1785_v54, %v700_v60  ;;  %v662_v63 = vpop.f32.mrb[2].mxu0  ;;  %v702_v0 = vpop.f32.mrb[2].mxu1 }
 0x173   : > { %v850_v1 = vadd.f32 %v1783_v53, %v662_v63  ;;  %v866_v2 = vadd.f32 %v1783_v53, %v702_v0  ;;  %v664_v3 = vpop.f32.mrb[3].mxu0  ;;  %v704_v4 = vpop.f32.mrb[3].mxu1 }
 0x174   : > { %v1208_v5 = vpack.c.bf16 %v849_v61, %v848_v57  ;;  %v1216_v6 = vpack.c.bf16 %v865_v62, %v864_v58  ;;  %v851_v7 = vadd.f32 %v1785_v54, %v664_v3  ;;  %v867_v8 = vadd.f32 %v1785_v54, %v704_v4 }
 0x176   : > { %976 = vst [vmem:[%s1796_s11] sm:$0xff] %v1208_v5  ;;  %984 = vst [vmem:[%s1796_s11 + $0x40] sm:$0xff] %v1216_v6  ;;  %v1209_v9 = vpack.c.bf16 %v851_v7, %v850_v1  ;;  %v1217_v10 = vpack.c.bf16 %v867_v8, %v866_v2 }
 0x178   : > { %977 = vst [vmem:[%s1796_s11 + $0x8] sm:$0xff] %v1209_v9  ;;  %985 = vst [vmem:[%s1796_s11 + $0x48] sm:$0xff] %v1217_v10  ;;  %v668_v11 = vpop.f32.mrb[4].mxu0  ;;  %v708_v12 = vpop.f32.mrb[4].mxu1 }
 0x179   : > { %v852_v13 = vadd.f32 %v1783_v53, %v668_v11  ;;  %v868_v14 = vadd.f32 %v1783_v53, %v708_v12  ;;  %v670_v15 = vpop.f32.mrb[5].mxu0  ;;  %v710_v16 = vpop.f32.mrb[5].mxu1 }
 0x17a   : > { %v853_v17 = vadd.f32 %v1785_v54, %v670_v15  ;;  %v869_v18 = vadd.f32 %v1785_v54, %v710_v16  ;;  %v672_v19 = vpop.f32.mrb[6].mxu0  ;;  %v712_v20 = vpop.f32.mrb[6].mxu1 }
 0x17b   : > { %v854_v21 = vadd.f32 %v1783_v53, %v672_v19  ;;  %v870_v22 = vadd.f32 %v1783_v53, %v712_v20  ;;  %v674_v23 = vpop.f32.mrb[7].mxu0  ;;  %v714_v24 = vpop.f32.mrb[7].mxu1 }
 0x17c   : > { %v1210_v25 = vpack.c.bf16 %v853_v17, %v852_v13  ;;  %v1218_v26 = vpack.c.bf16 %v869_v18, %v868_v14  ;;  %v855_v27 = vadd.f32 %v1785_v54, %v674_v23  ;;  %v871_v28 = vadd.f32 %v1785_v54, %v714_v24 }
 0x17e   : > { %978 = vst [vmem:[%s1796_s11 + $0x10] sm:$0xff] %v1210_v25  ;;  %986 = vst [vmem:[%s1796_s11 + $0x50] sm:$0xff] %v1218_v26  ;;  %v1211_v29 = vpack.c.bf16 %v855_v27, %v854_v21  ;;  %v1219_v30 = vpack.c.bf16 %v871_v28, %v870_v22 }
 0x180   : > { %979 = vst [vmem:[%s1796_s11 + $0x18] sm:$0xff] %v1211_v29  ;;  %987 = vst [vmem:[%s1796_s11 + $0x58] sm:$0xff] %v1219_v30  ;;  %v678_v31 = vpop.f32.mrb[8].mxu0  ;;  %v718_v32 = vpop.f32.mrb[8].mxu1 }
 0x181   : > { %v856_v33 = vadd.f32 %v1783_v53, %v678_v31  ;;  %v872_v34 = vadd.f32 %v1783_v53, %v718_v32  ;;  %v680_v35 = vpop.f32.mrb[9].mxu0  ;;  %v720_v36 = vpop.f32.mrb[9].mxu1 }
 0x182   : > { %v857_v37 = vadd.f32 %v1785_v54, %v680_v35  ;;  %v873_v38 = vadd.f32 %v1785_v54, %v720_v36  ;;  %v682_v39 = vpop.f32.mrb[10].mxu0  ;;  %v722_v40 = vpop.f32.mrb[10].mxu1 }
 0x183   : > { %v858_v41 = vadd.f32 %v1783_v53, %v682_v39  ;;  %v874_v42 = vadd.f32 %v1783_v53, %v722_v40  ;;  %v684_v43 = vpop.f32.mrb[11].mxu0  ;;  %v724_v44 = vpop.f32.mrb[11].mxu1 }
 0x184   : > { %v1212_v45 = vpack.c.bf16 %v857_v37, %v856_v33  ;;  %v1220_v46 = vpack.c.bf16 %v873_v38, %v872_v34  ;;  %v859_v47 = vadd.f32 %v1785_v54, %v684_v43  ;;  %v875_v48 = vadd.f32 %v1785_v54, %v724_v44 }
 0x186   : > { %980 = vst [vmem:[%s1796_s11 + $0x20] sm:$0xff] %v1212_v45  ;;  %988 = vst [vmem:[%s1796_s11 + $0x60] sm:$0xff] %v1220_v46  ;;  %v1213_v49 = vpack.c.bf16 %v859_v47, %v858_v41  ;;  %v1221_v50 = vpack.c.bf16 %v875_v48, %v874_v42 }
 0x188   : > { %981 = vst [vmem:[%s1796_s11 + $0x28] sm:$0xff] %v1213_v49  ;;  %989 = vst [vmem:[%s1796_s11 + $0x68] sm:$0xff] %v1221_v50  ;;  %v688_v51 = vpop.f32.mrb[12].mxu0  ;;  %v728_v52 = vpop.f32.mrb[12].mxu1 }
 0x189   : > { %v860_v55 = vadd.f32 %v1783_v53, %v688_v51  ;;  %v876_v56 = vadd.f32 %v1783_v53, %v728_v52  ;;  %v690_v57 = vpop.f32.mrb[13].mxu0  ;;  %v730_v58 = vpop.f32.mrb[13].mxu1 }
 0x18a   : > { %v861_v59 = vadd.f32 %v1785_v54, %v690_v57  ;;  %v877_v60 = vadd.f32 %v1785_v54, %v730_v58  ;;  %v692_v61 = vpop.f32.mrb[14].mxu0  ;;  %v732_v62 = vpop.f32.mrb[14].mxu1 }
 0x18b   : > { %v862_v63 = vadd.f32 %v1783_v53, %v692_v61  ;;  %v878_v0 = vadd.f32 %v1783_v53, %v732_v62  ;;  %v694_v1 = vpop.f32.mrb[15].mxu0  ;;  %v734_v2 = vpop.f32.mrb[15].mxu1 }
 0x18c   : > { %v1214_v3 = vpack.c.bf16 %v861_v59, %v860_v55  ;;  %v1222_v4 = vpack.c.bf16 %v877_v60, %v876_v56  ;;  %v863_v5 = vadd.f32 %v1785_v54, %v694_v1  ;;  %v879_v6 = vadd.f32 %v1785_v54, %v734_v2 }
 0x18e   : > { %982 = vst [vmem:[%s1796_s11 + $0x30] sm:$0xff] %v1214_v3  ;;  %990 = vst [vmem:[%s1796_s11 + $0x70] sm:$0xff] %v1222_v4  ;;  %v1215_v53 = vpack.c.bf16 %v863_v5, %v862_v63  ;;  %v1223_v7 = vpack.c.bf16 %v879_v6, %v878_v0 }
 0x190   : > { %983 = vst [vmem:[%s1796_s11 + $0x38] sm:$0xff] %v1215_v53  ;;  %991 = vst [vmem:[%s1796_s11 + $0x78] sm:$0xff] %v1223_v7 }
 0x191   : > { %1479 = shalt.err (!%p1476_p1)
}
 0x192   : > { %s1480_s9 = scalar_lea.hbm %s1839_s27, 2048  ;;  %s1484_s25 = scalar_lea.hbm %s1896_s3, 6144 }
 0x193   : > { %p1481_p5 = scmp.ne.s32.totalorder %s1839_s27, %s1480_s9  ;;  %p1485_p2 = scmp.lt.u32.totalorder %s1839_s27, %s1896_s3 }
 0x194   : > { %p1486_p8 = scmp.lt.u32.totalorder %s1484_s25, %s1480_s9  ;;  %p1488_p11 = scmp.lt.u32.totalorder %s1480_s9, %s1839_s27 }
 0x195   : > { %p1482_p7 = pnand %p1481_p5, %p1917_p4 }
 0x196   : > { %p1487_p9 = por %p1486_p8, %p1485_p2 }
 0x197   : > { %p1483_p12 = pneg %p1482_p7 }
 0x198   : > { %p1489_p13 = por %p1488_p11, %p1487_p9 }
 0x19a   : > { %p1490_p0 = pnand %p1489_p13, %p1483_p12 }
 0x19c   : > { %1493 = shalt.err (!%p1490_p0)
}
 0x19d   : > { %s1560_s11 = smov 128   ;;  %s1561_s26 = smov 384  }
 0x19e   : > { %s1562_s15 = smov 8  }
 0x19f   : > { %1263 = dma.vmem_to_hbm [thread:$0]  (%p1917_p4), %s1841_s4, 2048, %s1839_s27, %s993_s7, %s1560_s11, %s1561_s26, %s1562_s15  }
 0x1a0 PF: > { %p1280_p10 = scmp.ge.s32.totalorder %s1552_s17, 2  ;;  %s1024_s5 = sand.u32 1, %s1532_s12  }
 0x1a1   : > { %p1918_p3 = scmp.ne.s32.totalorder %s1908_s24, 0  ;;  %s1025_s18 = scalar_lea.sflag [#allocation5], %s1024_s5 }
 0x1a3   : > { %p1274_p6 = pnand %p1280_p10, %p1918_p3 }
 0x1a5   : > { %1527 = dma.done.wait (!%p1274_p6), %s1025_s18, 2048  }
 0x1a6   : > { %1529 = vsyncadd (!%p1274_p6), %s1025_s18, 4294965248  ;;  %s20_s17 = sadd.s32 1, %s1552_s17   ;;  %s1919_s12 = smov %s1536_s13 }
 0x1a7   : > { %p17_p1 = scmp.ge.s32.totalorder %s20_s17, 5   ;;  %s1920_s13 = smov %s1540_s14 }
 0x1a8   : > { %s1921_s14 = smov %s1696_s21  ;;  %s1922_s15 = smov %s1548_s16 }
 0x1a9   : > { %s1923_s16 = smov %s1925_s30  ;;  %19 = sbr.rel (!%p17_p1) target bundleno = 7 (0x7), region = 94 }
 0x1b0   :  { %1030 = vsyncpa [#allocation4], 1 }
 0x1b1   :  { %1032 = vsyncpa [#allocation4 + $0x1], 1 }
 0x1b2   :  { %1033 = vsyncpa [#allocation7], 1 }
 0x1b3   :  { %1035 = vsyncpa [#allocation7 + $0x1], 1 }
 0x1b4   :  { %1036 = vsyncpa [#allocation5], 1 }
 0x1b5   :  { %1038 = vsyncpa [#allocation5 + $0x1], 1 }

</bundles_post_ra>
